<compile_context>
chip_gen: v7x
topology: tpu7x:2x2x1
jax: 0.10.0
libtpu: 0.0.40
codegen_flags: <defaults>
</compile_context>

<pallas_src>
import jax
import jax.numpy as jnp
from jax.experimental import pallas as pl
from jax.experimental.pallas import tpu as pltpu

STATE_DIM = 32
SPEED_HIDDENS = [8, 8]
FUSION_HIDDENS = [32, 64, 64, 32, 32]

# weight-slab block indices (each block is a zero-padded 128x128 bf16 matrix)
#   W_R0S already contains the folded (sw1 @ rw0[STATE_DIM:]) weight.
W_R0I, W_R0S, W_R1, W_R2, W_R3, W_R4, W_R5 = range(7)
N_W_BLOCKS = 7
# bias-slab row indices (each row is a zero-padded 128-lane f32 vector)
#   B_RB0 already contains the folded (rb0 + sb1 @ rw0[STATE_DIM:]) bias.
B_SW0, B_SB0, B_RB0, B_RB1, B_RB2, B_RB3, B_RB4, B_RB5 = range(8)
N_B_ROWS = 8  # exactly one (8,128) f32 tile


def _linear_init(key, fan_in, fan_out):
    """PyTorch nn.Linear default init: U(-1/sqrt(fan_in), 1/sqrt(fan_in))."""
    kw, kb = jax.random.split(key)
    bound = 1.0 / float(fan_in) ** 0.5
    w = jax.random.uniform(kw, (fan_in, fan_out), jnp.float32, -bound, bound)
    b = jax.random.uniform(kb, (1, fan_out), jnp.float32, -bound, bound)
    return w, b


def make_params(seed=0):
    """Raw (unpacked) parameters, (in_features, out_features) layout."""
    key = jax.random.PRNGKey(seed)
    keys = jax.random.split(key, 8)
    sw0, sb0 = _linear_init(keys[0], 1, SPEED_HIDDENS[0])
    sw1, sb1 = _linear_init(keys[1], SPEED_HIDDENS[0], SPEED_HIDDENS[1])
    sizes = [STATE_DIM + SPEED_HIDDENS[-1]] + FUSION_HIDDENS + [1]
    reg = [_linear_init(keys[2 + j], sizes[j], sizes[j + 1])
           for j in range(len(sizes) - 1)]
    return dict(sw0=sw0, sb0=sb0, sw1=sw1, sb1=sb1, reg=reg)


def pack_params(raw):
    """Pack all weights/biases into one bf16 weight slab + one f32 bias slab,
    folding speed-encoder layer 1 into fusion layer 0."""
    sw0, sb0, sw1, sb1 = raw["sw0"], raw["sb0"], raw["sw1"], raw["sb1"]
    reg = raw["reg"]
    rw0, rb0 = reg[0]

    # algebraic fold (f32): spd_embed @ W0s + rb0 == h @ (sw1 @ W0s) + (rb0 + sb1 @ W0s)
    w0s = sw1 @ rw0[STATE_DIM:]                      # (8, 32)
    b0 = rb0 + sb1 @ rw0[STATE_DIM:]                 # (1, 32)

    def pad_wblock(w):
        blk = jnp.zeros((128, 128), jnp.float32)
        return blk.at[: w.shape[0], : w.shape[1]].set(w)

    # order must match W_* indices above
    w_blocks = [rw0[:STATE_DIM], w0s] + [w for w, _ in reg[1:]]
    w_slab = jnp.stack([pad_wblock(w) for w in w_blocks]).astype(jnp.bfloat16)

    def pad_row(v):
        r = jnp.zeros((1, 128), jnp.float32)
        return r.at[:, : v.shape[1]].set(v)

    # order must match B_* indices above
    b_rows = [sw0, sb0, b0] + [b for _, b in reg[1:]]
    b_slab = jnp.concatenate([pad_row(v) for v in b_rows], axis=0)
    return w_slab, b_slab  # (7,128,128) bf16, (8,128) f32


def vfunction_kernel(obs_ref, w_ref, b_ref, out_ref):
    f32, bf16 = jnp.float32, jnp.bfloat16

    obs = obs_ref[...]                                   # (TB, 33) f32
    img = obs[:, :STATE_DIM]                             # (TB, 32)
    speed = obs[:, STATE_DIM:STATE_DIM + 1]              # (TB, 1)

    b = b_ref[...]                                       # (8, 128) f32
    sw0 = b[B_SW0:B_SW0 + 1, :]
    sb0 = b[B_SB0:B_SB0 + 1, :]
    rb0 = b[B_RB0:B_RB0 + 1, :]                          # folded bias
    rb5 = b[B_RB5:B_RB5 + 1, :]

    # --- speed encoder layer 0: K=1 matmul done as VPU broadcast multiply ---
    h = jnp.maximum(speed * sw0 + sb0, 0.0)              # (TB,128), lanes>=8 are 0

    # --- fusion layer 0 (speed-encoder layer 1 folded into W_R0S / rb0) ---
    w0i = w_ref[W_R0I][:STATE_DIM, :]                    # (32,128) bf16 (tile-aligned)
    x = (jnp.dot(img.astype(bf16), w0i, preferred_element_type=f32)
         + jnp.dot(h.astype(bf16), w_ref[W_R0S], preferred_element_type=f32)
         + rb0)
    x = jnp.maximum(x, 0.0)                              # (TB,128), lanes>=32 are 0

    # --- hidden layers 1..4 (ReLU), fully unrolled ---
    for wi, bi in ((W_R1, B_RB1), (W_R2, B_RB2), (W_R3, B_RB3), (W_R4, B_RB4)):
        x = jnp.dot(x.astype(bf16), w_ref[wi], preferred_element_type=f32) \
            + b[bi:bi + 1, :]
        x = jnp.maximum(x, 0.0)

    # --- output layer (identity); value lives in lane 0 ---
    v = jnp.dot(x.astype(bf16), w_ref[W_R5], preferred_element_type=f32) + rb5

    # lane-dense store: (TB,1) column -> (1,TB) row (sublane->lane via XLU)
    out_ref[...] = jnp.transpose(v[:, 0:1])              # (1, TB)


def _choose_tiling(bs, tb):
    """Pick (num_tiles, tile_rows) for the batch.

    * single tile: 8-aligned, block == full padded array (no lane constraint).
    * multi tile:  balanced, 128-aligned tiles so the lane-dense (1, TB)
      output blocks stay unmasked; >=2 tiles whenever the padding waste is
      <=12.5% so both v7x TensorCores get work.
    """
    nb = pl.cdiv(bs, tb)
    if nb == 1 and bs >= 256:
        tb2 = pl.cdiv(pl.cdiv(bs, 2), 128) * 128
        if 2 * tb2 <= (pl.cdiv(bs, 8) * 8) * 9 // 8:     # waste cap: 12.5%
            nb = 2
    if nb == 1:
        tb_eff = pl.cdiv(bs, 8) * 8
    else:
        tb_eff = pl.cdiv(pl.cdiv(bs, nb), 128) * 128     # balanced tiles
    return nb, tb_eff


def vfunction_forward(obs_feat, w_slab, b_slab, *, tb=1024):
    """obs_feat: (bs, 33) f32 -> value (bs,) f32."""
    bs, feat = obs_feat.shape
    nb, tb_eff = _choose_tiling(bs, tb)
    bs_pad = nb * tb_eff
    if bs_pad != bs:
        obs_feat = jnp.pad(obs_feat, ((0, bs_pad - bs), (0, 0)))

    out = pl.pallas_call(
        vfunction_kernel,
        out_shape=jax.ShapeDtypeStruct((1, bs_pad), jnp.float32),
        grid=(nb,),
        in_specs=[
            pl.BlockSpec((tb_eff, feat), lambda i: (i, 0)),           # obs stream
            pl.BlockSpec((N_W_BLOCKS, 128, 128), lambda i: (0, 0, 0)),  # weight slab (invariant)
            pl.BlockSpec((N_B_ROWS, 128), lambda i: (0, 0)),          # bias slab (invariant)
        ],
        out_specs=pl.BlockSpec((1, tb_eff), lambda i: (0, i)),        # lane-dense output
        compiler_params=pltpu.CompilerParams(
            dimension_semantics=("parallel",)),                       # megacore on v7x
    )(obs_feat, w_slab, b_slab)
    return out.reshape(-1)[:bs]                                       # matches out.view(-1)


def vfunction_reference(obs_feat, raw):
    """Pure-JAX reference mirroring the kernel's folded, bf16-operand math."""
    bf = jnp.bfloat16

    def dot(a, w):
        return jnp.dot(a.astype(bf), w.astype(bf), preferred_element_type=jnp.float32)

    sw0, sb0, sw1, sb1 = raw["sw0"], raw["sb0"], raw["sw1"], raw["sb1"]
    reg = raw["reg"]
    rw0, rb0 = reg[0]
    w0s = sw1 @ rw0[STATE_DIM:]                  # same f32 fold as pack_params
    b0 = rb0 + sb1 @ rw0[STATE_DIM:]

    img = obs_feat[:, :STATE_DIM]
    speed = obs_feat[:, STATE_DIM:STATE_DIM + 1]
    h = jnp.maximum(speed * sw0 + sb0, 0.0)
    x = jnp.maximum(dot(img, rw0[:STATE_DIM]) + dot(h, w0s) + b0, 0.0)
    for w, b in reg[1:-1]:
        x = jnp.maximum(dot(x, w) + b, 0.0)
    w5, b5 = reg[-1]
    return (dot(x, w5) + b5).reshape(-1)


if __name__ == "__main__":
    raw = make_params(seed=0)
    w_slab, b_slab = pack_params(raw)

    # small demo batch (single tile, full-array block)
    bs = 8
    obs = jax.random.normal(jax.random.PRNGKey(0), (bs, STATE_DIM + 1), dtype=jnp.float32)
    out = jax.block_until_ready(vfunction_forward(obs, w_slab, b_slab))
    ref = vfunction_reference(obs, raw)
    assert out.shape == (bs,)
    assert jnp.allclose(out, ref, atol=1e-4, rtol=1e-4)

    # larger batch: exercises the balanced 2-tile grid, padding, lane-dense stores
    bs2 = 1000
    obs2 = jax.random.normal(jax.random.PRNGKey(1), (bs2, STATE_DIM + 1), dtype=jnp.float32)
    out2 = jax.block_until_ready(vfunction_forward(obs2, w_slab, b_slab))
    ref2 = vfunction_reference(obs2, raw)
    assert out2.shape == (bs2,)
    assert jnp.allclose(out2, ref2, atol=1e-4, rtol=1e-4)

    print("KERNEL_OK")
</pallas_src>

<mosaic_0001>
module attributes {stable_mosaic.version = 11 : i64} {
  func.func @vfunction_kernel(%arg0: i32, %arg1: memref<8x33xf32, #tpu.memory_space<vmem>>, %arg2: memref<7x128x128xbf16, #tpu.memory_space<vmem>>, %arg3: memref<8x128xf32, #tpu.memory_space<vmem>>, %arg4: memref<1x8xf32, #tpu.memory_space<vmem>>) attributes {dimension_semantics = [#tpu.dimension_semantics<parallel>], iteration_bounds = array<i64: 1>, scalar_prefetch = 0 : i64, scratch_operands = 0 : i64, tpu.core_type = #tpu.core_type<tc>, window_params = [{transform_indices = @transform_0, window_bounds = array<i64: 8, 33>}, {pipeline_mode = #tpu.pipeline_mode<synchronous>, transform_indices = @transform_1, window_bounds = array<i64: 7, 128, 128>}, {pipeline_mode = #tpu.pipeline_mode<synchronous>, transform_indices = @transform_2, window_bounds = array<i64: 8, 128>}, {transform_indices = @transform_3, window_bounds = array<i64: 1, 8>}]} {
    %c0 = arith.constant 0 : index
    %c0_0 = arith.constant 0 : index
    %0 = vector.load %arg1[%c0, %c0_0] : memref<8x33xf32, #tpu.memory_space<vmem>>, vector<8x33xf32>
    %1 = vector.extract_strided_slice %0 {offsets = [0, 0], sizes = [8, 32], strides = [1, 1]} : vector<8x33xf32> to vector<8x32xf32>
    %2 = vector.extract_strided_slice %0 {offsets = [0, 32], sizes = [8, 1], strides = [1, 1]} : vector<8x33xf32> to vector<8x1xf32>
    %c0_1 = arith.constant 0 : index
    %c0_2 = arith.constant 0 : index
    %3 = vector.load %arg3[%c0_1, %c0_2] : memref<8x128xf32, #tpu.memory_space<vmem>>, vector<8x128xf32>
    %4 = vector.extract_strided_slice %3 {offsets = [0, 0], sizes = [1, 128], strides = [1, 1]} : vector<8x128xf32> to vector<1x128xf32>
    %5 = vector.extract_strided_slice %3 {offsets = [1, 0], sizes = [1, 128], strides = [1, 1]} : vector<8x128xf32> to vector<1x128xf32>
    %6 = vector.extract_strided_slice %3 {offsets = [2, 0], sizes = [1, 128], strides = [1, 1]} : vector<8x128xf32> to vector<1x128xf32>
    %7 = vector.extract_strided_slice %3 {offsets = [7, 0], sizes = [1, 128], strides = [1, 1]} : vector<8x128xf32> to vector<1x128xf32>
    %8 = vector.broadcast %2 : vector<8x1xf32> to vector<8x128xf32>
    %9 = vector.broadcast %4 : vector<1x128xf32> to vector<8x128xf32>
    %10 = arith.mulf %8, %9 : vector<8x128xf32>
    %11 = vector.broadcast %5 : vector<1x128xf32> to vector<8x128xf32>
    %12 = arith.addf %10, %11 : vector<8x128xf32>
    %cst = arith.constant 0.000000e+00 : f32
    %13 = vector.broadcast %cst : f32 to vector<8x128xf32>
    %14 = arith.maximumf %12, %13 : vector<8x128xf32>
    %c0_3 = arith.constant 0 : index
    %c0_4 = arith.constant 0 : index
    %c0_5 = arith.constant 0 : index
    %15 = vector.load %arg2[%c0_3, %c0_4, %c0_5] : memref<7x128x128xbf16, #tpu.memory_space<vmem>>, vector<1x128x128xbf16>
    %16 = vector.shape_cast %15 : vector<1x128x128xbf16> to vector<128x128xbf16>
    %17 = vector.extract_strided_slice %16 {offsets = [0, 0], sizes = [32, 128], strides = [1, 1]} : vector<128x128xbf16> to vector<32x128xbf16>
    %18 = arith.truncf %1 : vector<8x32xf32> to vector<8x32xbf16>
    %cst_6 = arith.constant dense<0.000000e+00> : vector<8x128xf32>
    %19 = tpu.matmul %18, %17, %cst_6 {dimension_numbers = #tpu.dot_dimension_numbers<[1], [0], [0], [1], [0, 0, 1, 1], [], []>} : vector<8x32xbf16>, vector<32x128xbf16>, vector<8x128xf32> -> vector<8x128xf32>
    %20 = arith.truncf %14 : vector<8x128xf32> to vector<8x128xbf16>
    %c1 = arith.constant 1 : index
    %c0_7 = arith.constant 0 : index
    %c0_8 = arith.constant 0 : index
    %21 = vector.load %arg2[%c1, %c0_7, %c0_8] : memref<7x128x128xbf16, #tpu.memory_space<vmem>>, vector<1x128x128xbf16>
    %22 = vector.shape_cast %21 : vector<1x128x128xbf16> to vector<128x128xbf16>
    %cst_9 = arith.constant dense<0.000000e+00> : vector<8x128xf32>
    %23 = tpu.matmul %20, %22, %cst_9 {dimension_numbers = #tpu.dot_dimension_numbers<[1], [0], [0], [1], [0, 0, 1, 1], [], []>} : vector<8x128xbf16>, vector<128x128xbf16>, vector<8x128xf32> -> vector<8x128xf32>
    %24 = arith.addf %19, %23 : vector<8x128xf32>
    %25 = vector.broadcast %6 : vector<1x128xf32> to vector<8x128xf32>
    %26 = arith.addf %24, %25 : vector<8x128xf32>
    %cst_10 = arith.constant 0.000000e+00 : f32
    %27 = vector.broadcast %cst_10 : f32 to vector<8x128xf32>
    %28 = arith.maximumf %26, %27 : vector<8x128xf32>
    %29 = arith.truncf %28 : vector<8x128xf32> to vector<8x128xbf16>
    %c2 = arith.constant 2 : index
    %c0_11 = arith.constant 0 : index
    %c0_12 = arith.constant 0 : index
    %30 = vector.load %arg2[%c2, %c0_11, %c0_12] : memref<7x128x128xbf16, #tpu.memory_space<vmem>>, vector<1x128x128xbf16>
    %31 = vector.shape_cast %30 : vector<1x128x128xbf16> to vector<128x128xbf16>
    %cst_13 = arith.constant dense<0.000000e+00> : vector<8x128xf32>
    %32 = tpu.matmul %29, %31, %cst_13 {dimension_numbers = #tpu.dot_dimension_numbers<[1], [0], [0], [1], [0, 0, 1, 1], [], []>} : vector<8x128xbf16>, vector<128x128xbf16>, vector<8x128xf32> -> vector<8x128xf32>
    %33 = vector.extract_strided_slice %3 {offsets = [3, 0], sizes = [1, 128], strides = [1, 1]} : vector<8x128xf32> to vector<1x128xf32>
    %34 = vector.broadcast %33 : vector<1x128xf32> to vector<8x128xf32>
    %35 = arith.addf %32, %34 : vector<8x128xf32>
    %cst_14 = arith.constant 0.000000e+00 : f32
    %36 = vector.broadcast %cst_14 : f32 to vector<8x128xf32>
    %37 = arith.maximumf %35, %36 : vector<8x128xf32>
    %38 = arith.truncf %37 : vector<8x128xf32> to vector<8x128xbf16>
    %c3 = arith.constant 3 : index
    %c0_15 = arith.constant 0 : index
    %c0_16 = arith.constant 0 : index
    %39 = vector.load %arg2[%c3, %c0_15, %c0_16] : memref<7x128x128xbf16, #tpu.memory_space<vmem>>, vector<1x128x128xbf16>
    %40 = vector.shape_cast %39 : vector<1x128x128xbf16> to vector<128x128xbf16>
    %cst_17 = arith.constant dense<0.000000e+00> : vector<8x128xf32>
    %41 = tpu.matmul %38, %40, %cst_17 {dimension_numbers = #tpu.dot_dimension_numbers<[1], [0], [0], [1], [0, 0, 1, 1], [], []>} : vector<8x128xbf16>, vector<128x128xbf16>, vector<8x128xf32> -> vector<8x128xf32>
    %42 = vector.extract_strided_slice %3 {offsets = [4, 0], sizes = [1, 128], strides = [1, 1]} : vector<8x128xf32> to vector<1x128xf32>
    %43 = vector.broadcast %42 : vector<1x128xf32> to vector<8x128xf32>
    %44 = arith.addf %41, %43 : vector<8x128xf32>
    %cst_18 = arith.constant 0.000000e+00 : f32
    %45 = vector.broadcast %cst_18 : f32 to vector<8x128xf32>
    %46 = arith.maximumf %44, %45 : vector<8x128xf32>
    %47 = arith.truncf %46 : vector<8x128xf32> to vector<8x128xbf16>
    %c4 = arith.constant 4 : index
    %c0_19 = arith.constant 0 : index
    %c0_20 = arith.constant 0 : index
    %48 = vector.load %arg2[%c4, %c0_19, %c0_20] : memref<7x128x128xbf16, #tpu.memory_space<vmem>>, vector<1x128x128xbf16>
    %49 = vector.shape_cast %48 : vector<1x128x128xbf16> to vector<128x128xbf16>
    %cst_21 = arith.constant dense<0.000000e+00> : vector<8x128xf32>
    %50 = tpu.matmul %47, %49, %cst_21 {dimension_numbers = #tpu.dot_dimension_numbers<[1], [0], [0], [1], [0, 0, 1, 1], [], []>} : vector<8x128xbf16>, vector<128x128xbf16>, vector<8x128xf32> -> vector<8x128xf32>
    %51 = vector.extract_strided_slice %3 {offsets = [5, 0], sizes = [1, 128], strides = [1, 1]} : vector<8x128xf32> to vector<1x128xf32>
    %52 = vector.broadcast %51 : vector<1x128xf32> to vector<8x128xf32>
    %53 = arith.addf %50, %52 : vector<8x128xf32>
    %cst_22 = arith.constant 0.000000e+00 : f32
    %54 = vector.broadcast %cst_22 : f32 to vector<8x128xf32>
    %55 = arith.maximumf %53, %54 : vector<8x128xf32>
    %56 = arith.truncf %55 : vector<8x128xf32> to vector<8x128xbf16>
    %c5 = arith.constant 5 : index
    %c0_23 = arith.constant 0 : index
    %c0_24 = arith.constant 0 : index
    %57 = vector.load %arg2[%c5, %c0_23, %c0_24] : memref<7x128x128xbf16, #tpu.memory_space<vmem>>, vector<1x128x128xbf16>
    %58 = vector.shape_cast %57 : vector<1x128x128xbf16> to vector<128x128xbf16>
    %cst_25 = arith.constant dense<0.000000e+00> : vector<8x128xf32>
    %59 = tpu.matmul %56, %58, %cst_25 {dimension_numbers = #tpu.dot_dimension_numbers<[1], [0], [0], [1], [0, 0, 1, 1], [], []>} : vector<8x128xbf16>, vector<128x128xbf16>, vector<8x128xf32> -> vector<8x128xf32>
    %60 = vector.extract_strided_slice %3 {offsets = [6, 0], sizes = [1, 128], strides = [1, 1]} : vector<8x128xf32> to vector<1x128xf32>
    %61 = vector.broadcast %60 : vector<1x128xf32> to vector<8x128xf32>
    %62 = arith.addf %59, %61 : vector<8x128xf32>
    %cst_26 = arith.constant 0.000000e+00 : f32
    %63 = vector.broadcast %cst_26 : f32 to vector<8x128xf32>
    %64 = arith.maximumf %62, %63 : vector<8x128xf32>
    %65 = arith.truncf %64 : vector<8x128xf32> to vector<8x128xbf16>
    %c6 = arith.constant 6 : index
    %c0_27 = arith.constant 0 : index
    %c0_28 = arith.constant 0 : index
    %66 = vector.load %arg2[%c6, %c0_27, %c0_28] : memref<7x128x128xbf16, #tpu.memory_space<vmem>>, vector<1x128x128xbf16>
    %67 = vector.shape_cast %66 : vector<1x128x128xbf16> to vector<128x128xbf16>
    %cst_29 = arith.constant dense<0.000000e+00> : vector<8x128xf32>
    %68 = tpu.matmul %65, %67, %cst_29 {dimension_numbers = #tpu.dot_dimension_numbers<[1], [0], [0], [1], [0, 0, 1, 1], [], []>} : vector<8x128xbf16>, vector<128x128xbf16>, vector<8x128xf32> -> vector<8x128xf32>
    %69 = vector.broadcast %7 : vector<1x128xf32> to vector<8x128xf32>
    %70 = arith.addf %68, %69 : vector<8x128xf32>
    %71 = vector.extract_strided_slice %70 {offsets = [0, 0], sizes = [8, 1], strides = [1, 1]} : vector<8x128xf32> to vector<8x1xf32>
    %72 = tpu.transpose %71, [1, 0] : vector<8x1xf32> -> vector<1x8xf32>
    %c0_30 = arith.constant 0 : index
    %c0_31 = arith.constant 0 : index
    %73 = vector.load %arg4[%c0_30, %c0_31] : memref<1x8xf32, #tpu.memory_space<vmem>>, vector<1x8xf32>
    tpu.vector_store %arg4[%c0_30, %c0_31], %72 {strides = array<i32>} : memref<1x8xf32, #tpu.memory_space<vmem>>, vector<1x8xf32>,
    return
  }
  func.func @transform_0(%arg0: i32) -> (i32, i32) {
    %c0_i32 = arith.constant 0 : i32
    %c0_i32_0 = arith.constant 0 : i32
    return %arg0, %c0_i32 : i32, i32
  }
  func.func @transform_1(%arg0: i32) -> (i32, i32, i32) {
    %c0_i32 = arith.constant 0 : i32
    %c0_i32_0 = arith.constant 0 : i32
    %c0_i32_1 = arith.constant 0 : i32
    %c0_i32_2 = arith.constant 0 : i32
    return %c0_i32, %c0_i32_0, %c0_i32_1 : i32, i32, i32
  }
  func.func @transform_2(%arg0: i32) -> (i32, i32) {
    %c0_i32 = arith.constant 0 : i32
    %c0_i32_0 = arith.constant 0 : i32
    %c0_i32_1 = arith.constant 0 : i32
    return %c0_i32, %c0_i32_0 : i32, i32
  }
  func.func @transform_3(%arg0: i32) -> (i32, i32) {
    %c0_i32 = arith.constant 0 : i32
    %c0_i32_0 = arith.constant 0 : i32
    return %c0_i32, %arg0 : i32, i32
  }
}

</mosaic_0001>

<bundles_post_ra>
// kernel: tpu_custom_call.1
= control target key start
LH: loop header
LB: loop body
LE: loop exit
PB: predicated region body
PF: predicated region fallthrough
CT: control target
= control target key end

     0   :  { %8 = vsyncpa [#allocation3], 0  ;;  %s1399_s0 = inlined_call_operand.hbm [shape: f32[8,33], index: 0, kind: input, shape index: {}]   ;;  %s1400_s1 = inlined_call_operand.hbm [shape: bf16[7,128,128], index: 1, kind: input, shape index: {}]   ;;  %s1401_s2 = inlined_call_operand.hbm [shape: f32[8,128], index: 2, kind: input, shape index: {}]   ;;  %s1402_s3 = inlined_call_operand.hbm [shape: f32[1,8], index: 3, kind: output, shape index: {}]  }
   0x1   :  { %9 = vsyncpa [#allocation6], 0 }
   0x2   :  { %10 = vsyncpa [#allocation4], 0  ;;  %s1238_s12 = smov [#allocation5]   ;;  %s1144_s16 = scalar_lea.hbm %s1400_s1, 7168 }
   0x3   :  { %s26_s13 = sshll.u32 %s1238_s12, 4  ;;  %p1145_p0 = scmp.ne.s32.totalorder %s1400_s1, %s1144_s16  ;;  %s27_s13 = int_to_ptr.vmem [resolvable:$true] %s26_s13 }
   0x4   :  { %p1148_p1 = scmp.lt.u32.totalorder %s1144_s16, %s1400_s1 }
   0x6   :  { %p1150_p2 = pnand %p1148_p1, %p1145_p0 }
   0x8   :  { %1153 = shalt.err (!%p1150_p2)
}
   0x9   :  { %s1154_s21 = scalar_lea.vmem %s27_s13, 7168  ;;  %p1159_p4 = scmp.lt.s32.totalorder %s27_s13, %s27_s13 }
   0xa   :  { %p1155_p3 = scmp.ne.s32.totalorder %s27_s13, %s1154_s21  ;;  %p1160_p5 = scmp.lt.s32.totalorder %s1154_s21, %s1154_s21 }
   0xc   :  { %p1161_p6 = por %p1160_p5, %p1159_p4 }
   0xe   :  { %p1162_p7 = pnand %p1161_p6, %p1155_p3 }
  0x10   :  { %1165 = shalt.err (!%p1162_p7)
}
  0x11   :  { %s1239_s22 = smov 64   ;;  %s1240_s23 = smov 4  }
  0x12   :  { %32 = dma.hbm_to_vmem [thread:$0]  %s1400_s1, 7168, %s27_s13, [#allocation6], %s1239_s22, %s1239_s22, %s1240_s23  }
  0x13   :  { %s1241_s26 = smov [#allocation2]   ;;  %s1242_s28 = smov [#allocation7]  }
  0x14   :  { %s17_s27 = sshll.u32 %s1241_s26, 4  ;;  %s39_s29 = sshll.u32 %s1242_s28, 4  ;;  %s18_s27 = int_to_ptr.vmem [resolvable:$true] %s17_s27  ;;  %s40_s29 = int_to_ptr.vmem [resolvable:$true] %s39_s29 }
  0x15   :  { %s1166_s5 = scalar_lea.hbm %s1399_s0, 128 }
  0x16   :  { %p1167_p8 = scmp.ne.s32.totalorder %s1399_s0, %s1166_s5  ;;  %p1170_p9 = scmp.lt.u32.totalorder %s1166_s5, %s1399_s0 }
  0x18   :  { %p1172_p10 = pnand %p1170_p9, %p1167_p8 }
  0x1a   :  { %1175 = shalt.err (!%p1172_p10)
}
  0x1b   :  { %s1176_s1 = scalar_lea.vmem %s18_s27, 128  ;;  %p1181_p12 = scmp.lt.s32.totalorder %s18_s27, %s18_s27 }
  0x1c   :  { %p1177_p11 = scmp.ne.s32.totalorder %s18_s27, %s1176_s1  ;;  %p1182_p13 = scmp.lt.s32.totalorder %s1176_s1, %s1176_s1 }
  0x1e   :  { %p1183_p0 = por %p1182_p13, %p1181_p12 }
  0x20   :  { %p1184_p1 = pnand %p1183_p0, %p1177_p11 }
  0x22   :  { %1187 = shalt.err (!%p1184_p1)
}
  0x23   :  { %20 = dma.hbm_to_vmem [thread:$0]  %s1399_s0, 128, %s18_s27, [#allocation3]  }
  0x24   :  { %s1188_s14 = scalar_lea.hbm %s1401_s2, 128 }
  0x25   :  { %p1189_p2 = scmp.ne.s32.totalorder %s1401_s2, %s1188_s14  ;;  %p1192_p3 = scmp.lt.u32.totalorder %s1188_s14, %s1401_s2 }
  0x27   :  { %p1194_p4 = pnand %p1192_p3, %p1189_p2 }
  0x29   :  { %1197 = shalt.err (!%p1194_p4)
}
  0x2a   :  { %s1198_s19 = scalar_lea.vmem %s40_s29, 128  ;;  %p1203_p6 = scmp.lt.s32.totalorder %s40_s29, %s40_s29 }
  0x2b   :  { %p1199_p5 = scmp.ne.s32.totalorder %s40_s29, %s1198_s19  ;;  %p1204_p7 = scmp.lt.s32.totalorder %s1198_s19, %s1198_s19 }
  0x2d   :  { %p1205_p8 = por %p1204_p7, %p1203_p6 }
  0x2f   :  { %p1206_p9 = pnand %p1205_p8, %p1199_p5 }
  0x31   :  { %1209 = shalt.err (!%p1206_p9)
}
  0x32   :  { %42 = dma.hbm_to_vmem [thread:$0]  %s1401_s2, 128, %s40_s29, [#allocation6]  }
  0x33   :  { %1232 = dma.done.wait [#allocation3], 128  }
  0x34   :  { %1233 = vsyncadd [#allocation3], 4294967168 }
  0x35   :  { %1234 = dma.done.wait [#allocation6], 7296  }
  0x36   :  { %1235 = vsyncadd [#allocation6], 4294960000  ;;  %v1243_v0 = vmov 32   ;;  %v1244_v1 = vmov 0.0   ;;  %v53_v2 = vld [vmem:[#allocation2] sm:$0xff]  ;;  %v1094_v3 = vld [vmem:[#allocation5 + $0x40] sm:$0xff]   ;;  %v60_v20 = vlaneseq }
  0x37   :  { %1093 = vset.pattern.permute.xlu0 %v1243_v0  ;;  %956 = vmatprep.subr.bf16.mxu0 %v1244_v1  ;;  %v1095_v4 = vld [vmem:[#allocation5 + $0x48] sm:$0xff]   ;;  %vm1245_vm0 = vmmov 0   ;;  %v1096_v5 = vld [vmem:[#allocation5 + $0x50] sm:$0xff]   ;;  %v1100_v6 = vld [vmem:[#allocation5] sm:$0xff]   ;;  %v75_v9 = vpack.c.bf16 %v53_v2, %v53_v2  ;;  %vm194_vm1 = vcmask 261120   ;;  %s1246_s2 = smov [#allocation8]  }
  0x38   :  { %976 = vmatprep.subr.bf16.mxu1 %v1244_v1  ;;  %57 = vperm.xlu0 %1093, %v53_v2   ;;  %v1102_v7 = vld [vmem:[#allocation5 + $0x8] sm:$0xff]   ;;  %v1097_v8 = vld [vmem:[#allocation5 + $0x58] sm:$0xff]   ;;  %v1104_v10 = vld [vmem:[#allocation5 + $0x80] sm:$0xff]   ;;  %v1327_v21 = vshrl.u32 %v60_v20, 7  ;;  %s838_s21 = sshll.u32 %s1246_s2, 4  ;;  %vm830_vm2 = vcmask 57344   ;;  %s839_s21 = int_to_ptr.vmem [resolvable:$true] %s838_s21 }
  0x39   :  { %957 = vmatpush3.bf16.msra.mxu0 %v1094_v3  ;;  %980 = vmatprep.mubr.msk.bf16.mxu1 %vm1245_vm0, %v1244_v1  ;;  %v1098_v11 = vld [vmem:[#allocation5 + $0x60] sm:$0xff]   ;;  %v1105_v12 = vld [vmem:[#allocation5 + $0x88] sm:$0xff]   ;;  %v1106_v14 = vld [vmem:[#allocation5 + $0x90] sm:$0xff]   ;;  %s1210_s22 = scalar_lea.vmem %s839_s21, 16  ;;  %s1214_s23 = scalar_lea.vmem %s839_s21, 32 }
  0x3a   :  { %958 = vmatprep.subr.bf16.mxu0 %v1244_v1  ;;  %972 = vmatprep.mubr.msk.bf16.mxu0 %vm1245_vm0, %v1244_v1  ;;  %v1099_v13 = vld [vmem:[#allocation5 + $0x68] sm:$0xff]   ;;  %v1101_v15 = vld [vmem:[#allocation5 + $0x70] sm:$0xff]   ;;  %v1107_v16 = vld [vmem:[#allocation5 + $0x98] sm:$0xff]   ;;  %v62_v22 = vsub.s32 0, %v1327_v21  ;;  %v67_v24 = vsub.s32 1, %v1327_v21  ;;  %v240_v44 = vsub.s32 2, %v1327_v21  ;;  %p1211_p10 = scmp.ne.s32.totalorder %s839_s21, %s1210_s22  ;;  %p1215_p11 = scmp.lt.s32.totalorder %s839_s21, %s839_s21 }
  0x3b   :  { %977 = vmatpush3.bf16.msra.mxu1 %v1100_v6  ;;  %v1103_v17 = vld [vmem:[#allocation5 + $0x78] sm:$0xff]   ;;  %v1108_v18 = vld [vmem:[#allocation5 + $0xa0] sm:$0xff]   ;;  %v1109_v19 = vld [vmem:[#allocation5 + $0xa8] sm:$0xff]   ;;  %v264_v62 = vsub.s32 3, %v1327_v21  ;;  %p1216_p12 = scmp.lt.s32.totalorder %s1214_s23, %s1210_s22 }
  0x3c   :  { %978 = vmatprep.subr.bf16.mxu1 %v1244_v1  ;;  %v1330_v23 = vld [vmem:[#allocation7] sm:$0xff]  ;;  %v1110_v32 = vld [vmem:[#allocation5 + $0xb0] sm:$0xff]   ;;  %v1111_v33 = vld [vmem:[#allocation5 + $0xb8] sm:$0xff]  }
  0x3d   :  { %959 = vmatpush3.bf16.msra.mxu0 %v1095_v4  ;;  %v63_v25 = vrot.slane %v1330_v23, %v62_v22  ;;  %v68_v26 = vrot.slane %v1330_v23, %v67_v24  ;;  %v1112_v37 = vld [vmem:[#allocation5 + $0xc0] sm:$0xff]   ;;  %v1113_v39 = vld [vmem:[#allocation5 + $0xc8] sm:$0xff]   ;;  %v1114_v40 = vld [vmem:[#allocation5 + $0xd0] sm:$0xff]   ;;  %v241_v45 = vrot.slane %v1330_v23, %v240_v44  ;;  %v265_v63 = vrot.slane %v1330_v23, %v264_v62  ;;  %p1217_p13 = por %p1216_p12, %p1215_p11 }
  0x3e   :  { %960 = vmatprep.subr.bf16.mxu0 %v1244_v1  ;;  %v1115_v41 = vld [vmem:[#allocation5 + $0xd8] sm:$0xff]   ;;  %v1116_v42 = vld [vmem:[#allocation5 + $0xe0] sm:$0xff]   ;;  %v1117_v43 = vld [vmem:[#allocation5 + $0xe8] sm:$0xff]  }
  0x3f   :  { %979 = vmatpush3.bf16.msra.mxu1 %v1102_v7  ;;  %v1118_v54 = vld [vmem:[#allocation5 + $0xf0] sm:$0xff]   ;;  %v1119_v55 = vld [vmem:[#allocation5 + $0xf8] sm:$0xff]   ;;  %v1120_v56 = vld [vmem:[#allocation5 + $0x100] sm:$0xff]   ;;  %p1218_p0 = pnand %p1217_p13, %p1211_p10 }
  0x40   :  { %984 = vmatprep.subr.bf16.mxu1 %v1244_v1  ;;  %v1121_v57 = vld [vmem:[#allocation5 + $0x108] sm:$0xff]   ;;  %v1122_v58 = vld [vmem:[#allocation5 + $0x110] sm:$0xff]   ;;  %v1123_v59 = vld [vmem:[#allocation5 + $0x118] sm:$0xff]  }
  0x41   :  { %961 = vmatpush3.bf16.msra.mxu0 %v1096_v5  ;;  %v1124_v60 = vld [vmem:[#allocation5 + $0x120] sm:$0xff]   ;;  %v1125_v61 = vld [vmem:[#allocation5 + $0x128] sm:$0xff]   ;;  %v1142_v44 = vld [vmem:[#allocation5 + $0x1b0] sm:$0xff]  }
  0x42   :  { %962 = vmatprep.subr.bf16.mxu0 %v1244_v1  ;;  %981 = vmatmul.mubr.msk.bf16.vlgmr.msra.gmra.mrb[0].mxu1 %vm194_vm1, %v75_v9  ;;  %v1127_v9 = vld [vmem:[#allocation5 + $0x138] sm:$0xff]  }
  0x43   :  { %985 = vmatpush3.bf16.msra.mxu1 %v1104_v10  ;;  %1000 = vmatprep.mubr.msk.bf16.mxu1 %vm1245_vm0, %v1244_v1  ;;  %v1128_v10 = vld [vmem:[#allocation5 + $0x140] sm:$0xff]  }
  0x44   :  { %986 = vmatprep.subr.bf16.mxu1 %v1244_v1 }
  0x45   :  { %963 = vmatpush3.bf16.msra.mxu0 %v1097_v8  ;;  %v1126_v8 = vld [vmem:[#allocation5 + $0x130] sm:$0xff]  }
  0x46   :  { %964 = vmatprep.subr.bf16.mxu0 %v1244_v1 }
  0x47   :  { %987 = vmatpush3.bf16.msra.mxu1 %v1105_v12  ;;  %v1130_v12 = vld [vmem:[#allocation5 + $0x150] sm:$0xff]  }
  0x48   :  { %988 = vmatprep.subr.bf16.mxu1 %v1244_v1 }
  0x49   :  { %965 = vmatpush3.bf16.msra.mxu0 %v1098_v11  ;;  %v1129_v11 = vld [vmem:[#allocation5 + $0x148] sm:$0xff]  }
  0x4a   :  { %966 = vmatprep.subr.bf16.mxu0 %v1244_v1 }
  0x4b   :  { %989 = vmatpush3.bf16.msra.mxu1 %v1106_v14  ;;  %v1132_v14 = vld [vmem:[#allocation5 + $0x160] sm:$0xff]  }
  0x4c   :  { %990 = vmatprep.subr.bf16.mxu1 %v1244_v1 }
  0x4d   :  { %967 = vmatpush3.bf16.msra.mxu0 %v1099_v13  ;;  %v1131_v13 = vld [vmem:[#allocation5 + $0x158] sm:$0xff]  }
  0x4e   :  { %968 = vmatprep.subr.bf16.mxu0 %v1244_v1 }
  0x4f   :  { %991 = vmatpush3.bf16.msra.mxu1 %v1107_v16  ;;  %v375_v16 = vsub.s32 4, %v1327_v21 }
  0x50   :  { %992 = vmatprep.subr.bf16.mxu1 %v1244_v1 }
  0x51   :  { %969 = vmatpush3.bf16.msra.mxu0 %v1101_v15  ;;  %v1133_v15 = vld [vmem:[#allocation5 + $0x168] sm:$0xff]  }
  0x52   :  { %970 = vmatprep.subr.bf16.mxu0 %v1244_v1 }
  0x53   :  { %993 = vmatpush3.bf16.msra.mxu1 %v1108_v18 }
  0x54   :  { %994 = vmatprep.subr.bf16.mxu1 %v1244_v1 }
  0x55   :  { %971 = vmatpush3.bf16.msra.mxu0 %v1103_v17  ;;  %v376_v17 = vrot.slane %v1330_v23, %v375_v16 }
  0x56   :  { %1004 = vmatprep.subr.bf16.mxu0 %v1244_v1 }
  0x57   :  { %995 = vmatpush3.bf16.msra.mxu1 %v1109_v19 }
  0x58   :  { %996 = vmatprep.subr.bf16.mxu1 %v1244_v1 }
  0x5b   :  { %997 = vmatpush3.bf16.msra.mxu1 %v1110_v32  ;;  %v1139_v32 = vld [vmem:[#allocation5 + $0x198] sm:$0xff]  }
  0x5c   :  { %998 = vmatprep.subr.bf16.mxu1 %v1244_v1 }
  0x5f   :  { %999 = vmatpush3.bf16.msra.mxu1 %v1111_v33  ;;  %v1140_v33 = vld [vmem:[#allocation5 + $0x1a0] sm:$0xff]  }
  0x60   :  { %1024 = vmatprep.subr.bf16.mxu1 %v1244_v1 }
  0xb7   :  { %v58_v27 = vpop.permute.xlu0 %57 }
  0xb8   :  { %v64_v28 = vmul.f32 %v63_v25, %v58_v27  ;;  %v1134_v27 = vld [vmem:[#allocation5 + $0x170] sm:$0xff]  }
  0xba   :  { %v69_v29 = vadd.f32 %v68_v26, %v64_v28  ;;  %v1135_v28 = vld [vmem:[#allocation5 + $0x178] sm:$0xff]  }
  0xbc   :  { %v70_v30 = vmax.f32 %v69_v29, 0.0  ;;  %v1136_v29 = vld [vmem:[#allocation5 + $0x180] sm:$0xff]  }
  0xbe   :  { %v76_v31 = vpack.c.bf16 %v70_v30, %v70_v30  ;;  %v1137_v30 = vld [vmem:[#allocation5 + $0x188] sm:$0xff]  }
  0xc0   :  { %973 = vmatmul.mubr.bf16.vlgmr.msra.gmra.mrb[0].mxu0 %v76_v31  ;;  %v1138_v31 = vld [vmem:[#allocation5 + $0x190] sm:$0xff]  }
  0xc1   :  { %1020 = vmatprep.mubr.msk.bf16.mxu0 %vm1245_vm0, %v1244_v1  ;;  %1005 = vmatpush3.bf16.msra.mxu0 %v1112_v37 }
  0xc2   :  { %1006 = vmatprep.subr.bf16.mxu0 %v1244_v1 }
  0xc5   :  { %1007 = vmatpush3.bf16.msra.mxu0 %v1113_v39 }
  0xc6   :  { %1008 = vmatprep.subr.bf16.mxu0 %v1244_v1 }
  0xc9   :  { %1009 = vmatpush3.bf16.msra.mxu0 %v1114_v40 }
  0xca   :  { %1010 = vmatprep.subr.bf16.mxu0 %v1244_v1 }
  0xcd   :  { %1011 = vmatpush3.bf16.msra.mxu0 %v1115_v41 }
  0xce   :  { %1012 = vmatprep.subr.bf16.mxu0 %v1244_v1 }
  0xd1   :  { %1013 = vmatpush3.bf16.msra.mxu0 %v1116_v42 }
  0xd2   :  { %1014 = vmatprep.subr.bf16.mxu0 %v1244_v1 }
  0xd5   :  { %1015 = vmatpush3.bf16.msra.mxu0 %v1117_v43 }
  0xd6   :  { %1016 = vmatprep.subr.bf16.mxu0 %v1244_v1 }
  0xd9   :  { %1017 = vmatpush3.bf16.msra.mxu0 %v1118_v54 }
  0xda   :  { %1018 = vmatprep.subr.bf16.mxu0 %v1244_v1 }
  0xdd   :  { %1019 = vmatpush3.bf16.msra.mxu0 %v1119_v55  ;;  %v708_v55 = vsub.s32 7, %v1327_v21 }
  0xde   :  { %1044 = vmatprep.subr.bf16.mxu0 %v1244_v1 }
 0x115   :  { %v232_v34 = vpop.f32.mrb[0].mxu1 }
 0x116   :  { %v982_v35 = vpop.f32.mrb[1].mxu1 }
 0x117   :  { %v235_v36 = vpop.f32.mrb[2].mxu1  ;;  %v486_v35 = vsub.s32 5, %v1327_v21 }
 0x118   :  { %v983_v38 = vpop.f32.mrb[3].mxu1 }
 0x119   :  { %v487_v36 = vrot.slane %v1330_v23, %v486_v35 }
 0x193   :  { %v176_v46 = vpop.f32.mrb[0].mxu0 }
 0x194   :  { %v233_v47 = vadd.f32 %v232_v34, %v176_v46  ;;  %v974_v48 = vpop.f32.mrb[1].mxu0  ;;  %v1141_v34 = vld [vmem:[#allocation5 + $0x1a8] sm:$0xff]   ;;  %v597_v46 = vsub.s32 6, %v1327_v21 }
 0x195   :  { %v179_v49 = vpop.f32.mrb[2].mxu0 }
 0x196   :  { %v242_v50 = vadd.f32 %v241_v45, %v233_v47  ;;  %v975_v51 = vpop.f32.mrb[3].mxu0  ;;  %v1143_v45 = vld [vmem:[#allocation5 + $0x1b8] sm:$0xff]   ;;  %v598_v47 = vrot.slane %v1330_v23, %v597_v46 }
 0x198   :  { %v243_v52 = vmax.f32 %v242_v50, 0.0 }
 0x19a   :  { %v244_v53 = vpack.c.bf16 %v243_v52, %v243_v52 }
 0x19c   :  { %1001 = vmatmul.mubr.bf16.vlgmr.msra.gmra.mrb[4].mxu1 %v244_v53 }
 0x19d   :  { %1040 = vmatprep.mubr.msk.bf16.mxu1 %vm1245_vm0, %v1244_v1  ;;  %1025 = vmatpush3.bf16.msra.mxu1 %v1120_v56  ;;  %v709_v56 = vrot.slane %v1330_v23, %v708_v55 }
 0x19e   :  { %1026 = vmatprep.subr.bf16.mxu1 %v1244_v1 }
 0x1a1   :  { %1027 = vmatpush3.bf16.msra.mxu1 %v1121_v57 }
 0x1a2   :  { %1028 = vmatprep.subr.bf16.mxu1 %v1244_v1 }
 0x1a5   :  { %1029 = vmatpush3.bf16.msra.mxu1 %v1122_v58 }
 0x1a6   :  { %1030 = vmatprep.subr.bf16.mxu1 %v1244_v1 }
 0x1a9   :  { %1031 = vmatpush3.bf16.msra.mxu1 %v1123_v59 }
 0x1aa   :  { %1032 = vmatprep.subr.bf16.mxu1 %v1244_v1 }
 0x1ad   :  { %1033 = vmatpush3.bf16.msra.mxu1 %v1124_v60 }
 0x1ae   :  { %1034 = vmatprep.subr.bf16.mxu1 %v1244_v1 }
 0x1b1   :  { %1035 = vmatpush3.bf16.msra.mxu1 %v1125_v61 }
 0x1b2   :  { %1036 = vmatprep.subr.bf16.mxu1 %v1244_v1 }
 0x1b5   :  { %1037 = vmatpush3.bf16.msra.mxu1 %v1126_v8 }
 0x1b6   :  { %1038 = vmatprep.subr.bf16.mxu1 %v1244_v1 }
 0x1b9   :  { %1039 = vmatpush3.bf16.msra.mxu1 %v1127_v9 }
 0x1ba   :  { %1064 = vmatprep.subr.bf16.mxu1 %v1244_v1 }
 0x26f   :  { %v348_v0 = vpop.f32.mrb[4].mxu1 }
 0x270   :  { %v349_v2 = vadd.f32 %v348_v0, %v265_v63  ;;  %v1002_v3 = vpop.f32.mrb[5].mxu1 }
 0x271   :  { %v351_v4 = vpop.f32.mrb[6].mxu1 }
 0x272   :  { %v354_v5 = vmax.f32 %v349_v2, 0.0  ;;  %v1003_v6 = vpop.f32.mrb[7].mxu1 }
 0x274   :  { %v355_v7 = vpack.c.bf16 %v354_v5, %v354_v5 }
 0x276   :  { %1021 = vmatmul.mubr.bf16.vlgmr.msra.gmra.mrb[4].mxu0 %v355_v7 }
 0x277   :  { %1060 = vmatprep.mubr.msk.bf16.mxu0 %vm1245_vm0, %v1244_v1  ;;  %1045 = vmatpush3.bf16.msra.mxu0 %v1128_v10 }
 0x278   :  { %1046 = vmatprep.subr.bf16.mxu0 %v1244_v1 }
 0x27b   :  { %1047 = vmatpush3.bf16.msra.mxu0 %v1129_v11 }
 0x27c   :  { %1048 = vmatprep.subr.bf16.mxu0 %v1244_v1 }
 0x27f   :  { %1049 = vmatpush3.bf16.msra.mxu0 %v1130_v12 }
 0x280   :  { %1050 = vmatprep.subr.bf16.mxu0 %v1244_v1 }
 0x283   :  { %1051 = vmatpush3.bf16.msra.mxu0 %v1131_v13 }
 0x284   :  { %1052 = vmatprep.subr.bf16.mxu0 %v1244_v1 }
 0x287   :  { %1053 = vmatpush3.bf16.msra.mxu0 %v1132_v14 }
 0x288   :  { %1054 = vmatprep.subr.bf16.mxu0 %v1244_v1 }
 0x28b   :  { %1055 = vmatpush3.bf16.msra.mxu0 %v1133_v15 }
 0x28c   :  { %1056 = vmatprep.subr.bf16.mxu0 %v1244_v1 }
 0x28f   :  { %1057 = vmatpush3.bf16.msra.mxu0 %v1134_v27 }
 0x290   :  { %1058 = vmatprep.subr.bf16.mxu0 %v1244_v1 }
 0x293   :  { %1059 = vmatpush3.bf16.msra.mxu0 %v1135_v28 }
 0x349   :  { %v459_v18 = vpop.f32.mrb[4].mxu0 }
 0x34a   :  { %v460_v19 = vadd.f32 %v459_v18, %v376_v17  ;;  %v1022_v20 = vpop.f32.mrb[5].mxu0 }
 0x34b   :  { %v462_v22 = vpop.f32.mrb[6].mxu0 }
 0x34c   :  { %v465_v24 = vmax.f32 %v460_v19, 0.0  ;;  %v1023_v25 = vpop.f32.mrb[7].mxu0 }
 0x34e   :  { %v466_v26 = vpack.c.bf16 %v465_v24, %v465_v24 }
 0x350   :  { %1041 = vmatmul.mubr.bf16.vlgmr.msra.gmra.mrb[8].mxu1 %v466_v26 }
 0x351   :  { %1080 = vmatprep.mubr.msk.bf16.mxu1 %vm1245_vm0, %v1244_v1  ;;  %1065 = vmatpush3.bf16.msra.mxu1 %v1136_v29 }
 0x352   :  { %1066 = vmatprep.subr.bf16.mxu1 %v1244_v1 }
 0x355   :  { %1067 = vmatpush3.bf16.msra.mxu1 %v1137_v30 }
 0x356   :  { %1068 = vmatprep.subr.bf16.mxu1 %v1244_v1 }
 0x359   :  { %1069 = vmatpush3.bf16.msra.mxu1 %v1138_v31 }
 0x35a   :  { %1070 = vmatprep.subr.bf16.mxu1 %v1244_v1 }
 0x35d   :  { %1071 = vmatpush3.bf16.msra.mxu1 %v1139_v32 }
 0x35e   :  { %1072 = vmatprep.subr.bf16.mxu1 %v1244_v1 }
 0x361   :  { %1073 = vmatpush3.bf16.msra.mxu1 %v1140_v33 }
 0x362   :  { %1074 = vmatprep.subr.bf16.mxu1 %v1244_v1 }
 0x365   :  { %1075 = vmatpush3.bf16.msra.mxu1 %v1141_v34 }
 0x366   :  { %1076 = vmatprep.subr.bf16.mxu1 %v1244_v1 }
 0x369   :  { %1077 = vmatpush3.bf16.msra.mxu1 %v1142_v44 }
 0x36a   :  { %1078 = vmatprep.subr.bf16.mxu1 %v1244_v1 }
 0x36d   :  { %1079 = vmatpush3.bf16.msra.mxu1 %v1143_v45 }
 0x423   :  { %v570_v37 = vpop.f32.mrb[8].mxu1 }
 0x424   :  { %v571_v38 = vadd.f32 %v570_v37, %v487_v36  ;;  %v1042_v39 = vpop.f32.mrb[9].mxu1 }
 0x425   :  { %v573_v40 = vpop.f32.mrb[10].mxu1 }
 0x426   :  { %v576_v41 = vmax.f32 %v571_v38, 0.0  ;;  %v1043_v42 = vpop.f32.mrb[11].mxu1 }
 0x428   :  { %v577_v43 = vpack.c.bf16 %v576_v41, %v576_v41 }
 0x42a   :  { %1061 = vmatmul.mubr.bf16.vlgmr.msra.gmra.mrb[8].mxu0 %v577_v43 }
 0x4fd   :  { %v681_v48 = vpop.f32.mrb[8].mxu0 }
 0x4fe   :  { %v682_v49 = vadd.f32 %v681_v48, %v598_v47  ;;  %v1062_v50 = vpop.f32.mrb[9].mxu0 }
 0x4ff   :  { %v684_v51 = vpop.f32.mrb[10].mxu0 }
 0x500   :  { %v687_v52 = vmax.f32 %v682_v49, 0.0  ;;  %v1063_v53 = vpop.f32.mrb[11].mxu0 }
 0x502   :  { %v688_v54 = vpack.c.bf16 %v687_v52, %v687_v52 }
 0x504   :  { %1081 = vmatmul.mubr.bf16.vlgmr.msra.gmra.mrb[12].mxu1 %v688_v54 }
 0x5d7   :  { %v792_v57 = vpop.f32.mrb[12].mxu1 }
 0x5d8   :  { %v793_v1 = vadd.f32 %v792_v57, %v709_v56  ;;  %v1082_v58 = vpop.f32.mrb[13].mxu1 }
 0x5d9   :  { %v795_v59 = vpop.f32.mrb[14].mxu1 }
 0x5da   :  { %798 = vxpose.xlu0.b32.start.end [1/1] (short) (narrow) %v793_v1, 8  ;;  %v1083_v60 = vpop.f32.mrb[15].mxu1 }
 0x65a   :  { %v814_v61 = vpop.trf.xlu0 }
 0x65b   :  { %831 = vst.msk [vmem:[#allocation8] sm:$0x1] %vm830_vm2, %v814_v61 }
 0x65c   :  { %1221 = shalt.err (!%p1218_p0)
}
 0x65d   :  { %s1222_s26 = scalar_lea.hbm %s1402_s3, 16 }
 0x65e   :  { %p1223_p1 = scmp.ne.s32.totalorder %s1402_s3, %s1222_s26  ;;  %p1226_p2 = scmp.lt.u32.totalorder %s1222_s26, %s1402_s3 }
 0x660   :  { %p1228_p3 = pnand %p1226_p2, %p1223_p1 }
 0x662   :  { %1231 = shalt.err (!%p1228_p3)
}
 0x663   :  { %841 = dma.vmem_to_hbm [thread:$0]  %s839_s21, 16, %s1402_s3, [#allocation4]  }
 0x664   :  { %1236 = dma.done.wait [#allocation4], 16  }
 0x665   :  { %1237 = vsyncadd [#allocation4], 4294967280 }
 0x666   :  { %845 = vsyncpa [#allocation3], 1 }
 0x667   :  { %846 = vsyncpa [#allocation6], 1 }
 0x668   :  { %847 = vsyncpa [#allocation4], 1 }

</bundles_post_ra>
